<compile_context>
chip_gen: v5e
topology: v5e:2x2
jax: 0.10.0
libtpu: 0.0.40
codegen_flags: <defaults>
</compile_context>

<pallas_src>
import functools

import jax
import jax.numpy as jnp
from jax.experimental import pallas as pl
from jax.experimental.pallas import tpu as pltpu


def _cdiv(a, b):
    return -(-a // b)


def _label_smooth_kernel(x_ref, g_ref, o_ref, m_sc, s_sc, sumx_sc, *,
                         smoothing, n_rows, n_classes, tile_rows, tile_cols,
                         col_mask_needed):
    # x_ref: (TB, TK) logits block, g_ref: (TB, 1) gathered target logit (f32),
    # o_ref: (1, 1, 128) per-row-tile partial loss sum (broadcast across lanes).
    i = pl.program_id(0)
    k = pl.program_id(1)
    nk = pl.num_programs(1)

    @pl.when(k == 0)
    def _init():
        m_sc[...] = jnp.full(m_sc.shape, -jnp.inf, dtype=jnp.float32)
        s_sc[...] = jnp.zeros(s_sc.shape, dtype=jnp.float32)
        sumx_sc[...] = jnp.zeros(sumx_sc.shape, dtype=jnp.float32)

    x = x_ref[...].astype(jnp.float32)                       # (TB, TK)

    if col_mask_needed:
        # Only emitted when C is not a multiple of TK (Python-static flag).
        col = jax.lax.broadcasted_iota(jnp.int32, x.shape, 1) + k * tile_cols
        valid_c = col < n_classes
        x_max_in = jnp.where(valid_c, x, -jnp.inf)
        x_sum_in = jnp.where(valid_c, x, 0.0)
    else:
        x_max_in = x
        x_sum_in = x

    # Online logsumexp pieces (m = running max, s = running sum exp(x - m), sumx = sum x).
    m_prev = m_sc[...]
    m_new = jnp.maximum(m_prev, jnp.max(x_max_in, axis=-1, keepdims=True))
    alpha = jnp.exp(m_prev - m_new)
    p_sum = jnp.sum(jnp.exp(x_max_in - m_new), axis=-1, keepdims=True)
    s_sc[...] = alpha * s_sc[...] + p_sum
    sumx_sc[...] = sumx_sc[...] + jnp.sum(x_sum_in, axis=-1, keepdims=True)
    m_sc[...] = m_new

    @pl.when(k == nk - 1)
    def _finalize():
        lse = m_sc[...] + jnp.log(s_sc[...])                 # (TB, 1) logsumexp of raw logits
        g = g_ref[...]                                       # (TB, 1) target logit (f32)
        c = float(n_classes)
        # C == 1 degenerate case: smoothed-CE limit is 0 (matches the torch module after scatter).
        off = float(smoothing) / (c - 1.0) if n_classes > 1 else 0.0
        on = 1.0 - float(smoothing)
        # loss_row = -(off * sum(log_prob) + (on - off) * log_prob[target])
        #   sum(log_prob)    = sumx - C * lse
        #   log_prob[target] = g - lse
        per_row = -(off * (sumx_sc[...] - c * lse) + (on - off) * (g - lse))   # (TB, 1)
        # Mask rows >= N (partial last row tile reads undefined padding — no jnp.pad copy).
        row = jax.lax.broadcasted_iota(jnp.int32, per_row.shape, 0) + i * tile_rows
        per_row = jnp.where(row < n_rows, per_row, 0.0)
        tile_sum = jnp.sum(per_row, axis=0, keepdims=True)                     # (1, 1)
        o_ref[...] = jnp.broadcast_to(tile_sum, o_ref.shape)                   # lane-dense store


def label_smooth_loss(logits, target, smoothing=0.0, *,
                      max_tile_rows=1024, max_tile_cols=8192,
                      vmem_limit_bytes=None):
    """logits: (N, C) float (f32 or bf16), target: (N,) int. Returns scalar mean loss (f32)."""
    n, c = logits.shape
    itemsize = jnp.dtype(logits.dtype).itemsize

    # VMEM ceiling from the actual chip (64 MiB on v7x, 128 MiB on v5e/v6e), with headroom.
    try:
        vmem_cap = int(pltpu.get_tpu_info().vmem_capacity_bytes)
    except Exception:  # pragma: no cover - conservative fallback
        vmem_cap = 64 * 1024 * 1024
    tile_budget = min(vmem_cap // 2, 64 * 1024 * 1024)
    if vmem_limit_bytes is None:
        vmem_limit_bytes = min(int(vmem_cap * 0.85), 100 * 1024 * 1024)

    # Class (lane) tiling: full rows when they fit, otherwise lane-dense multiples of 128.
    if c <= max_tile_cols:
        tk = c
    else:
        tk = max(128, (max_tile_cols // 128) * 128)
    nk = _cdiv(c, tk)
    col_mask_needed = (nk > 1) and (c % tk != 0)

    # Row (sublane) tiling sized against real per-step VMEM:
    # double-buffered input block (2 * itemsize / elem) + ~4 f32 temporaries per element.
    per_row_bytes = tk * (2 * itemsize + 4 * 4) + 64
    tb = tile_budget // per_row_bytes
    tb = max(8, min(tb, max_tile_rows))
    tb = (tb // 8) * 8
    n8 = ((n + 7) // 8) * 8
    tb = min(tb, n8)

    # Keep the parallel row axis split into >= 2 (prefer 4) tiles when there is enough
    # work, so both TensorCores get a share on v7x.
    if n >= 1024 and _cdiv(n, tb) < 4:
        tb = min(tb, max(8, ((_cdiv(n, 4) + 7) // 8) * 8))
    elif n >= 256 and _cdiv(n, tb) < 2:
        tb = min(tb, max(8, ((_cdiv(n, 2) + 7) // 8) * 8))
    num_row_tiles = _cdiv(n, tb)

    # Gather the target logit once in the wrapper (O(N)); removes the in-kernel
    # (TB, C) iota / compare / select and its full-width reduce.
    t2d = target.astype(jnp.int32).reshape(n, 1)
    gathered = jnp.take_along_axis(logits, t2d, axis=-1).astype(jnp.float32)

    # TODO(synk): for C < 128, pack 128 // C rows into the lane dimension (segmented
    # reductions) to recover lane utilization; currently narrow-C tiles use C lanes only.

    kernel = functools.partial(
        _label_smooth_kernel, smoothing=float(smoothing), n_rows=n, n_classes=c,
        tile_rows=tb, tile_cols=tk, col_mask_needed=col_mask_needed)

    cost = pl.CostEstimate(
        flops=7 * n * c,
        transcendentals=n * c,
        bytes_accessed=n * c * itemsize + n * 4 + num_row_tiles * 128 * 4,
    )

    partial_sums = pl.pallas_call(
        kernel,
        out_shape=jax.ShapeDtypeStruct((num_row_tiles, 1, 128), jnp.float32),
        grid_spec=pltpu.PrefetchScalarGridSpec(
            num_scalar_prefetch=0,
            grid=(num_row_tiles, nk),
            in_specs=[
                pl.BlockSpec((tb, tk), lambda i, k: (i, k)),
                pl.BlockSpec((tb, 1), lambda i, k: (i, 0)),
            ],
            out_specs=pl.BlockSpec((1, 1, 128), lambda i, k: (i, 0, 0)),
            scratch_shapes=[
                pltpu.VMEM((tb, 1), jnp.float32),   # running max
                pltpu.VMEM((tb, 1), jnp.float32),   # running sum exp
                pltpu.VMEM((tb, 1), jnp.float32),   # running sum x
            ],
        ),
        compiler_params=pltpu.CompilerParams(
            dimension_semantics=("parallel", "arbitrary"),
            vmem_limit_bytes=vmem_limit_bytes,
        ),
        cost_estimate=cost,
    )(logits, gathered)

    # Per-tile partials already exclude rows >= N; wrapper does the tiny final reduction.
    return jnp.sum(partial_sums[:, 0, 0]) / jnp.float32(n)


def _reference(logits, target, smoothing):
    n, c = logits.shape
    log_prob = jax.nn.log_softmax(logits.astype(jnp.float32), axis=-1)
    w = jnp.full((n, c), smoothing / (c - 1.0), dtype=jnp.float32)
    w = w.at[jnp.arange(n), target].set(1.0 - smoothing)
    return jnp.mean(jnp.sum(-w * log_prob, axis=-1))


if __name__ == "__main__":
    key = jax.random.PRNGKey(0)
    k1, k2, k3, k4 = jax.random.split(key, 4)

    # Primary check: small shape implied by the module (N=16 rows, C=32 classes).
    N, C = 16, 32
    smoothing = 0.1
    logits = jax.random.normal(k1, (N, C), dtype=jnp.float32)
    target = jax.random.randint(k2, (N,), 0, C, dtype=jnp.int32)
    loss = jax.block_until_ready(label_smooth_loss(logits, target, smoothing=smoothing))
    ref = _reference(logits, target, smoothing)
    assert jnp.allclose(loss, ref, rtol=1e-4, atol=1e-5), (loss, ref)

    # Secondary check: exercises the no-pad partial last row tile (N=24, tb=16), the
    # multi-column-tile online-logsumexp path (C=320, tk=128 -> 3 k-steps) and both the
    # row- and column-masking code.
    N2, C2 = 24, 320
    logits2 = jax.random.normal(k3, (N2, C2), dtype=jnp.float32)
    target2 = jax.random.randint(k4, (N2,), 0, C2, dtype=jnp.int32)
    loss2 = jax.block_until_ready(
        label_smooth_loss(logits2, target2, smoothing=0.2,
                          max_tile_rows=16, max_tile_cols=128))
    ref2 = _reference(logits2, target2, 0.2)
    assert jnp.allclose(loss2, ref2, rtol=1e-4, atol=1e-5), (loss2, ref2)

    print("KERNEL_OK")
</pallas_src>

<mosaic_0001>
module attributes {stable_mosaic.version = 11 : i64} {
  func.func @_label_smooth_kernel(%arg0: i32, %arg1: i32, %arg2: memref<16x32xf32, #tpu.memory_space<vmem>>, %arg3: memref<16x1xf32, #tpu.memory_space<vmem>>, %arg4: memref<1x1x128xf32, #tpu.memory_space<vmem>>, %arg5: memref<16x1xf32, #tpu.memory_space<vmem>>, %arg6: memref<16x1xf32, #tpu.memory_space<vmem>>, %arg7: memref<16x1xf32, #tpu.memory_space<vmem>>) attributes {dimension_semantics = [#tpu.dimension_semantics<parallel>, #tpu.dimension_semantics<arbitrary>], iteration_bounds = array<i64: 1, 1>, scalar_prefetch = 0 : i64, scratch_operands = 3 : i64, tpu.core_type = #tpu.core_type<tc>, window_params = [{transform_indices = @transform_0, window_bounds = array<i64: 16, 32>}, {transform_indices = @transform_1, window_bounds = array<i64: 16, 1>}, {transform_indices = @transform_2, window_bounds = array<i64: 1, 1, 128>}]} {
    %c0_i32 = arith.constant 0 : i32
    %0 = arith.cmpi eq, %arg1, %c0_i32 : i32
    %1 = arith.extui %0 : i1 to i32
    %c0_i32_0 = arith.constant 0 : i32
    %2 = arith.cmpi ne, %1, %c0_i32_0 : i32
    scf.if %2 {
      %cst_18 = arith.constant 0xFF800000 : f32
      %28 = vector.broadcast %cst_18 : f32 to vector<16x1xf32>
      %c0_19 = arith.constant 0 : index
      %c0_20 = arith.constant 0 : index
      %29 = vector.load %arg5[%c0_19, %c0_20] : memref<16x1xf32, #tpu.memory_space<vmem>>, vector<16x1xf32>
      tpu.vector_store %arg5[%c0_19, %c0_20], %28 {strides = array<i32>} : memref<16x1xf32, #tpu.memory_space<vmem>>, vector<16x1xf32>,
      %cst_21 = arith.constant 0.000000e+00 : f32
      %30 = vector.broadcast %cst_21 : f32 to vector<16x1xf32>
      %c0_22 = arith.constant 0 : index
      %c0_23 = arith.constant 0 : index
      %31 = vector.load %arg6[%c0_22, %c0_23] : memref<16x1xf32, #tpu.memory_space<vmem>>, vector<16x1xf32>
      tpu.vector_store %arg6[%c0_22, %c0_23], %30 {strides = array<i32>} : memref<16x1xf32, #tpu.memory_space<vmem>>, vector<16x1xf32>,
      %cst_24 = arith.constant 0.000000e+00 : f32
      %32 = vector.broadcast %cst_24 : f32 to vector<16x1xf32>
      %c0_25 = arith.constant 0 : index
      %c0_26 = arith.constant 0 : index
      %33 = vector.load %arg7[%c0_25, %c0_26] : memref<16x1xf32, #tpu.memory_space<vmem>>, vector<16x1xf32>
      tpu.vector_store %arg7[%c0_25, %c0_26], %32 {strides = array<i32>} : memref<16x1xf32, #tpu.memory_space<vmem>>, vector<16x1xf32>,
    } else {
    }
    %c0 = arith.constant 0 : index
    %c0_1 = arith.constant 0 : index
    %3 = vector.load %arg2[%c0, %c0_1] : memref<16x32xf32, #tpu.memory_space<vmem>>, vector<16x32xf32>
    %c0_2 = arith.constant 0 : index
    %c0_3 = arith.constant 0 : index
    %4 = vector.load %arg5[%c0_2, %c0_3] : memref<16x1xf32, #tpu.memory_space<vmem>>, vector<16x1xf32>
    %cst = arith.constant dense<0xFF800000> : vector<16xf32>
    %5 = vector.multi_reduction <maximumf>, %3, %cst [1] : vector<16x32xf32> to vector<16xf32>
    %6 = vector.shape_cast %5 : vector<16xf32> to vector<16x1xf32>
    %7 = arith.maximumf %4, %6 : vector<16x1xf32>
    %8 = arith.subf %4, %7 : vector<16x1xf32>
    %9 = math.exp %8 : vector<16x1xf32>
    %10 = vector.broadcast %7 : vector<16x1xf32> to vector<16x32xf32>
    %11 = arith.subf %3, %10 : vector<16x32xf32>
    %12 = math.exp %11 : vector<16x32xf32>
    %cst_4 = arith.constant dense<0.000000e+00> : vector<16xf32>
    %13 = vector.multi_reduction <add>, %12, %cst_4 [1] : vector<16x32xf32> to vector<16xf32>
    %14 = vector.shape_cast %13 : vector<16xf32> to vector<16x1xf32>
    %c0_5 = arith.constant 0 : index
    %c0_6 = arith.constant 0 : index
    %15 = vector.load %arg6[%c0_5, %c0_6] : memref<16x1xf32, #tpu.memory_space<vmem>>, vector<16x1xf32>
    %16 = arith.mulf %9, %15 : vector<16x1xf32>
    %17 = arith.addf %16, %14 : vector<16x1xf32>
    %c0_7 = arith.constant 0 : index
    %c0_8 = arith.constant 0 : index
    %18 = vector.load %arg6[%c0_7, %c0_8] : memref<16x1xf32, #tpu.memory_space<vmem>>, vector<16x1xf32>
    tpu.vector_store %arg6[%c0_7, %c0_8], %17 {strides = array<i32>} : memref<16x1xf32, #tpu.memory_space<vmem>>, vector<16x1xf32>,
    %c0_9 = arith.constant 0 : index
    %c0_10 = arith.constant 0 : index
    %19 = vector.load %arg7[%c0_9, %c0_10] : memref<16x1xf32, #tpu.memory_space<vmem>>, vector<16x1xf32>
    %cst_11 = arith.constant dense<0.000000e+00> : vector<16xf32>
    %20 = vector.multi_reduction <add>, %3, %cst_11 [1] : vector<16x32xf32> to vector<16xf32>
    %21 = vector.shape_cast %20 : vector<16xf32> to vector<16x1xf32>
    %22 = arith.addf %19, %21 : vector<16x1xf32>
    %c0_12 = arith.constant 0 : index
    %c0_13 = arith.constant 0 : index
    %23 = vector.load %arg7[%c0_12, %c0_13] : memref<16x1xf32, #tpu.memory_space<vmem>>, vector<16x1xf32>
    tpu.vector_store %arg7[%c0_12, %c0_13], %22 {strides = array<i32>} : memref<16x1xf32, #tpu.memory_space<vmem>>, vector<16x1xf32>,
    %c0_14 = arith.constant 0 : index
    %c0_15 = arith.constant 0 : index
    %24 = vector.load %arg5[%c0_14, %c0_15] : memref<16x1xf32, #tpu.memory_space<vmem>>, vector<16x1xf32>
    tpu.vector_store %arg5[%c0_14, %c0_15], %7 {strides = array<i32>} : memref<16x1xf32, #tpu.memory_space<vmem>>, vector<16x1xf32>,
    %c0_i32_16 = arith.constant 0 : i32
    %25 = arith.cmpi eq, %arg1, %c0_i32_16 : i32
    %26 = arith.extui %25 : i1 to i32
    %c0_i32_17 = arith.constant 0 : i32
    %27 = arith.cmpi ne, %26, %c0_i32_17 : i32
    scf.if %27 {
      %c0_18 = arith.constant 0 : index
      %c0_19 = arith.constant 0 : index
      %28 = vector.load %arg5[%c0_18, %c0_19] : memref<16x1xf32, #tpu.memory_space<vmem>>, vector<16x1xf32>
      %c0_20 = arith.constant 0 : index
      %c0_21 = arith.constant 0 : index
      %29 = vector.load %arg6[%c0_20, %c0_21] : memref<16x1xf32, #tpu.memory_space<vmem>>, vector<16x1xf32>
      %30 = math.log %29 : vector<16x1xf32>
      %31 = arith.addf %28, %30 : vector<16x1xf32>
      %c0_22 = arith.constant 0 : index
      %c0_23 = arith.constant 0 : index
      %32 = vector.load %arg3[%c0_22, %c0_23] : memref<16x1xf32, #tpu.memory_space<vmem>>, vector<16x1xf32>
      %c0_24 = arith.constant 0 : index
      %c0_25 = arith.constant 0 : index
      %33 = vector.load %arg7[%c0_24, %c0_25] : memref<16x1xf32, #tpu.memory_space<vmem>>, vector<16x1xf32>
      %cst_26 = arith.constant 3.200000e+01 : f32
      %34 = vector.broadcast %cst_26 : f32 to vector<16x1xf32>
      %35 = arith.mulf %34, %31 : vector<16x1xf32>
      %36 = arith.subf %33, %35 : vector<16x1xf32>
      %cst_27 = arith.constant 0.0032258064 : f32
      %37 = vector.broadcast %cst_27 : f32 to vector<16x1xf32>
      %38 = arith.mulf %37, %36 : vector<16x1xf32>
      %39 = arith.subf %32, %31 : vector<16x1xf32>
      %cst_28 = arith.constant 0.896774172 : f32
      %40 = vector.broadcast %cst_28 : f32 to vector<16x1xf32>
      %41 = arith.mulf %40, %39 : vector<16x1xf32>
      %42 = arith.addf %38, %41 : vector<16x1xf32>
      %cst_29 = arith.constant 0.000000e+00 : f32
      %43 = vector.broadcast %cst_29 : f32 to vector<16x1xf32>
      %44 = arith.subf %43, %42 : vector<16x1xf32>
      %45 = tpu.iota {dimensions = array<i32: 0>} : vector<16x1xi32>
      %c16_i32 = arith.constant 16 : i32
      %46 = arith.muli %arg0, %c16_i32 : i32
      %47 = vector.broadcast %46 : i32 to vector<16x1xi32>
      %48 = arith.addi %45, %47 : vector<16x1xi32>
      %c16_i32_30 = arith.constant 16 : i32
      %49 = vector.broadcast %c16_i32_30 : i32 to vector<16x1xi32>
      %50 = arith.cmpi slt, %48, %49 : vector<16x1xi32>
      %cst_31 = arith.constant 0.000000e+00 : f32
      %51 = vector.broadcast %cst_31 : f32 to vector<16x1xf32>
      %52 = arith.select %50, %44, %51 : vector<16x1xi1>, vector<16x1xf32>
      %cst_32 = arith.constant dense<0.000000e+00> : vector<1xf32>
      %53 = vector.multi_reduction <add>, %52, %cst_32 [0] : vector<16x1xf32> to vector<1xf32>
      %54 = vector.shape_cast %53 : vector<1xf32> to vector<1x1xf32>
      %55 = vector.shape_cast %54 : vector<1x1xf32> to vector<1x1x1xf32>
      %56 = vector.broadcast %55 : vector<1x1x1xf32> to vector<1x1x128xf32>
      %c0_33 = arith.constant 0 : index
      %c0_34 = arith.constant 0 : index
      %c0_35 = arith.constant 0 : index
      %57 = vector.load %arg4[%c0_33, %c0_34, %c0_35] : memref<1x1x128xf32, #tpu.memory_space<vmem>>, vector<1x1x128xf32>
      tpu.vector_store %arg4[%c0_33, %c0_34, %c0_35], %56 {strides = array<i32>} : memref<1x1x128xf32, #tpu.memory_space<vmem>>, vector<1x1x128xf32>,
    } else {
    }
    return
  }
  func.func @transform_0(%arg0: i32, %arg1: i32) -> (i32, i32) {
    %c0_i32 = arith.constant 0 : i32
    return %arg0, %arg1 : i32, i32
  }
  func.func @transform_1(%arg0: i32, %arg1: i32) -> (i32, i32) {
    %c0_i32 = arith.constant 0 : i32
    %c0_i32_0 = arith.constant 0 : i32
    return %arg0, %c0_i32 : i32, i32
  }
  func.func @transform_2(%arg0: i32, %arg1: i32) -> (i32, i32, i32) {
    %c0_i32 = arith.constant 0 : i32
    %c0_i32_0 = arith.constant 0 : i32
    %c0_i32_1 = arith.constant 0 : i32
    return %arg0, %c0_i32, %c0_i32_0 : i32, i32, i32
  }
}

</mosaic_0001>

<bundles_post_ra>
// kernel: tpu_custom_call.1
= control target key start
LH: loop header
LB: loop body
LE: loop exit
PB: predicated region body
PF: predicated region fallthrough
CT: control target
= control target key end

     0   :  { %vm27_vm0 = vcmask 261120   ;;  %s259_s0 = inlined_call_operand.vmem [shape: f32[16,32], index: 0, kind: input, shape index: {}]   ;;  %s260_s1 = inlined_call_operand.vmem [shape: f32[16,1], index: 1, kind: input, shape index: {}]   ;;  %s261_s2 = inlined_call_operand.hbm [shape: f32[1,1,128], index: 2, kind: output, shape index: {}]  }
   0x1   :  { %v23_v0 = vld [vmem:[%s259_s0] sm:$0xff] }
   0x2   :  { %7 = vsyncpa [#allocation6], 0  ;;  %v28_v1 = vsel %vm27_vm0, %v23_v0, -inf  ;;  %v24_v2 = vld [vmem:[%s259_s0 + $0x8] sm:$0xff]  ;;  %vm16_vm1 = vcmask 7168   ;;  %v205_v4 = vmov -inf  }
   0x3   :  { %29 = vmax.xlane.f32.xlu0 %v28_v1  ;;  %v31_v3 = vsel %vm27_vm0, %v24_v2, -inf  ;;  %17 = vst.msk [vmem:[#allocation2] sm:$0xff] %vm16_vm1, %v205_v4  ;;  %v206_v5 = vmov 0   ;;  %v207_v6 = vmov 0.0   ;;  %v75_v15 = vsel %vm27_vm0, %v23_v0, 0.0  ;;  %v100_v53 = vld [vmem:[%s260_s1] sm:$0xff] }
   0x4   :  { %18 = vst.msk [vmem:[#allocation2 + $0x8] sm:$0xff] %vm16_vm1, %v205_v4  ;;  %164 = vset.pattern.permute.xlu1 %v206_v5  ;;  %165 = vset.pattern.permute.xlu2 %v206_v5  ;;  %v78_v16 = vsel %vm27_vm0, %v24_v2, 0.0  ;;  %v101_v59 = vld [vmem:[%s260_s1 + $0x8] sm:$0xff]  ;;  %s208_s1 = smov [#allocation5]   ;;  %s151_s19 = sshll.u32 %s261_s2, 4  ;;  %s152_s19 = int_to_ptr.hbm [resolvable:$true] %s151_s19 }
   0x5   :  { %166 = vset.pattern.permute.xlu0 %v206_v5  ;;  %19 = vst.msk [vmem:[#allocation3] sm:$0xff] %vm16_vm1, %v207_v6  ;;  %s149_s16 = sshll.u32 %s208_s1, 4  ;;  %s150_s16 = int_to_ptr.vmem [resolvable:$true] %s149_s16 }
   0x6   :  { %20 = vst.msk [vmem:[#allocation3 + $0x8] sm:$0xff] %vm16_vm1, %v207_v6 }
   0x7   :  { %21 = vst.msk [vmem:[#allocation4] sm:$0xff] %vm16_vm1, %v207_v6 }
   0x8   :  { %22 = vst.msk [vmem:[#allocation4 + $0x8] sm:$0xff] %vm16_vm1, %v207_v6 }
   0xa   :  { %v25_v7 = vld [vmem:[#allocation2] sm:$0xff] }
   0xb   :  { %32 = vmax.xlane.f32.xlu0 %v31_v3  ;;  %v26_v11 = vld [vmem:[#allocation2 + $0x8] sm:$0xff] }
   0xc   :  { %v64_v36 = vld [vmem:[#allocation3] sm:$0xff] }
   0xd   :  { %v65_v41 = vld [vmem:[#allocation3 + $0x8] sm:$0xff] }
   0xe   :  { %v73_v28 = vld [vmem:[#allocation4] sm:$0xff] }
   0xf   :  { %v74_v29 = vld [vmem:[#allocation4 + $0x8] sm:$0xff] }
  0x13   :  { %76 = vadd.xlane.f32.xlu0 %v75_v15 }
  0x76   :  { %v30_v8 = vpop.xlane.xlu0 %29 }
  0x77   :  { %v34_v9 = vmax.f32 %v25_v7, %v30_v8 }
  0x79   :  { %v36_v10 = vsub.f32 %v25_v7, %v34_v9  ;;  %85 = vst.msk [vmem:[#allocation2] sm:$0xff] %vm16_vm1, %v34_v9  ;;  %44 = vperm.xlu1 %164, %v34_v9  }
  0x7b   :  { %v38_v33 = vmul.f32 1.442695, %v36_v10 }
  0x7e   :  { %v33_v12 = vpop.xlane.xlu0 %32 }
  0x7f   :  { %v35_v13 = vmax.f32 %v26_v11, %v33_v12 }
  0x80   :  { %v90_v49 = vld [vmem:[#allocation2] sm:$0xff] }
  0x81   :  { %v37_v14 = vsub.f32 %v26_v11, %v35_v13  ;;  %86 = vst.msk [vmem:[#allocation2 + $0x8] sm:$0xff] %vm16_vm1, %v35_v13  ;;  %49 = vperm.xlu1 %164, %v35_v13  }
  0x83   :  { %v40_v34 = vmul.f32 1.442695, %v37_v14 }
  0x86   :  { %v77_v27 = vpop.xlane.xlu0 %76 }
  0x87   :  { %v81_v31 = vadd.f32 %v77_v27, %v73_v28 }
  0x88   :  { %v91_v58 = vld [vmem:[#allocation2 + $0x8] sm:$0xff] }
  0x89   :  { %83 = vst.msk [vmem:[#allocation4] sm:$0xff] %vm16_vm1, %v81_v31 }
  0x90   :  { %v102_v51 = vld [vmem:[#allocation4] sm:$0xff] }
  0xab   :  { %79 = vadd.xlane.f32.xlu1 %v78_v16 }
  0xeb   :  { %v45_v17 = vpop.permute.xlu1 %44 }
  0xec   :  { %v52_v18 = vsub.f32 %v23_v0, %v45_v17 }
  0xee   :  { %v54_v19 = vmul.f32 1.442695, %v52_v18 }
  0xf0   :  { %167 = vpow2.f32 %v54_v19 }
  0xf3   :  { %v50_v20 = vpop.permute.xlu1 %49 }
  0xf4   :  { %v53_v21 = vsub.f32 %v24_v2, %v50_v20 }
  0xf6   :  { %v168_v22 = vpop.eup %167  ;;  %v56_v23 = vmul.f32 1.442695, %v53_v21 }
  0xf7   :  { %v58_v24 = vsel %vm27_vm0, %v168_v22, 0.0 }
  0xf8   :  { %169 = vpow2.f32 %v56_v23  ;;  %59 = vadd.xlane.f32.xlu2 %v58_v24 }
  0xf9   :  { %171 = vpow2.f32 %v38_v33 }
  0xfa   :  { %173 = vpow2.f32 %v40_v34 }
  0xfe   :  { %v170_v25 = vpop.eup %169 }
  0xff   :  { %v61_v26 = vsel %vm27_vm0, %v170_v25, 0.0  ;;  %v172_v35 = vpop.eup %171 }
 0x100   :  { %62 = vadd.xlane.f32.xlu2 %v61_v26  ;;  %v66_v37 = vmul.f32 %v172_v35, %v64_v36  ;;  %v174_v40 = vpop.eup %173 }
 0x101   :  { %v67_v42 = vmul.f32 %v174_v40, %v65_v41 }
 0x11e   :  { %v80_v30 = vpop.xlane.xlu1 %79 }
 0x11f   :  { %v82_v32 = vadd.f32 %v80_v30, %v74_v29 }
 0x121   :  { %84 = vst.msk [vmem:[#allocation4 + $0x8] sm:$0xff] %vm16_vm1, %v82_v32 }
 0x128   :  { %v103_v62 = vld [vmem:[#allocation4 + $0x8] sm:$0xff] }
 0x16b   :  { %v60_v38 = vpop.xlane.xlu2 %59 }
 0x16c   :  { %v68_v39 = vadd.f32 %v66_v37, %v60_v38 }
 0x16e   :  { %71 = vst.msk [vmem:[#allocation3] sm:$0xff] %vm16_vm1, %v68_v39 }
 0x173   :  { %v63_v43 = vpop.xlane.xlu2 %62 }
 0x174   :  { %v69_v44 = vadd.f32 %v67_v42, %v63_v43 }
 0x175   :  { %v92_v45 = vld [vmem:[#allocation3] sm:$0xff] }
 0x176   :  { %72 = vst.msk [vmem:[#allocation3 + $0x8] sm:$0xff] %vm16_vm1, %v69_v44  ;;  %175 = vlog2.f32 %v92_v45 }
 0x17c   :  { %v176_v46 = vpop.eup %175 }
 0x17d   :  { %v93_v47 = vld [vmem:[#allocation3 + $0x8] sm:$0xff]  ;;  %v95_v48 = vmul.f32 0.6931472, %v176_v46 }
 0x17e   :  { %177 = vlog2.f32 %v93_v47 }
 0x17f   :  { %v98_v50 = vadd.f32 %v95_v48, %v90_v49 }
 0x181   :  { %v104_v52 = vmul.f32 32.0, %v98_v50  ;;  %v110_v57 = vsub.f32 %v100_v53, %v98_v50 }
 0x183   :  { %v106_v54 = vsub.f32 %v102_v51, %v104_v52  ;;  %v112_v1 = vmul.f32 0.8967742, %v110_v57 }
 0x184   :  { %v178_v55 = vpop.eup %177 }
 0x185   :  { %v97_v56 = vmul.f32 0.6931472, %v178_v55  ;;  %v108_v61 = vmul.f32 0.0032258064, %v106_v54 }
 0x187   :  { %v99_v60 = vadd.f32 %v97_v56, %v91_v58  ;;  %v114_v3 = vadd.f32 %v112_v1, %v108_v61 }
 0x189   :  { %v105_v63 = vmul.f32 32.0, %v99_v60  ;;  %v111_v0 = vsub.f32 %v101_v59, %v99_v60  ;;  %v116_v7 = vsub.f32 0.0, %v114_v3 }
 0x18b   :  { %v107_v2 = vsub.f32 %v103_v62, %v105_v63  ;;  %v113_v5 = vmul.f32 0.8967742, %v111_v0  ;;  %v129_v9 = vsel %vm16_vm1, %v116_v7, 0.0 }
 0x18d   :  { %v109_v4 = vmul.f32 0.0032258064, %v107_v2 }
 0x18f   :  { %v115_v6 = vadd.f32 %v113_v5, %v109_v4 }
 0x191   :  { %v117_v8 = vsub.f32 0.0, %v115_v6 }
 0x193   :  { %v130_v10 = vsel %vm16_vm1, %v117_v8, 0.0 }
 0x194   :  { %v131_v11 = vadd.f32 %v130_v10, %v129_v9 }
 0x196   :  { %v132_v12 = vrot.slane %v131_v11, 4 }
 0x198   :  { %v133_v13 = vadd.f32 %v132_v12, %v131_v11 }
 0x19a   :  { %v134_v14 = vrot.slane %v133_v13, 2 }
 0x19c   :  { %v135_v15 = vadd.f32 %v134_v14, %v133_v13 }
 0x19e   :  { %v136_v16 = vrot.slane %v135_v15, 1 }
 0x1a0   :  { %v137_v17 = vadd.f32 %v136_v16, %v135_v15 }
 0x1a2   :  { %140 = vperm.xlu2 %165, %v137_v17  }
 0x1fc   :  { %v141_v18 = vpop.permute.xlu2 %140 }
 0x1fd   :  { %143 = vst [vmem:[#allocation5] sm:$0x1] %v141_v18 }
 0x1fe   :  { %154 = dma.vmem_to_hbm [thread:$0]  %s150_s16, 16, %s152_s19, [#allocation6]  }
 0x1ff   :  { %203 = dma.done.wait [#allocation6], 16  }
 0x200   :  { %204 = vsyncadd [#allocation6], 4294967280 }
 0x201   :  { %159 = vsyncpa [#allocation6], 1 }

</bundles_post_ra>
